<compile_context>
chip_gen: v7x
topology: tpu7x:2x2x1
jax: 0.10.0
libtpu: 0.0.40
codegen_flags: <defaults>
</compile_context>

<pallas_src>
import functools

import jax
import jax.numpy as jnp
from jax.experimental import pallas as pl
from jax.experimental.pallas import tpu as pltpu


def _conv3x3_prelu_kernel(x_ref, w_ref, b_ref, hh_ref, ww_ref, alpha_ref,
                          o_ref, p_ref, *, H, W):
    """Fused 3x3 'same' conv + bias + PReLU for one image (channels-first).

    x_ref     : (1, Cin, H*W)   input image, spatially flattened (VMEM)
    w_ref     : (Cout, 9*Cin)   conv weights, columns ordered (kh, kw, ci) (VMEM)
    b_ref     : (Cout, 1)       conv bias (VMEM)
    hh_ref    : (1, H*W) int32  row index of each flattened pixel (VMEM)
    ww_ref    : (1, H*W) int32  col index of each flattened pixel (VMEM)
    alpha_ref : (1, 1)          PReLU slope (SMEM)
    o_ref     : (1, Cout, H*W)  conv + PReLU output (VMEM)
    p_ref     : (9*Cin, H*W)    scratch: im2col matrix (VMEM)
    """
    C = x_ref.shape[1]
    HW = H * W

    x2d = x_ref[0]      # (C, HW)
    hh = hh_ref[...]    # (1, HW)
    ww = ww_ref[...]    # (1, HW)

    # Build the im2col matrix once: P[(kh*3+kw)*C + ci, p] = x[ci, h+kh-1, w+kw-1]
    # (0 outside the image), where p = h*W + w.  A shift by s = (kh-1)*W+(kw-1)
    # on the flattened pixel axis plus a border mask realizes each tap, so no
    # padded copy of the input is ever made.  (pltpu.roll could replace the two
    # lane slices below with a single XLU rotate.)
    for kh in range(3):
        for kw in range(3):
            dh, dw = kh - 1, kw - 1
            t = kh * 3 + kw
            s = (dh * W + dw) % HW
            if s == 0:
                # Center tap: no shift, never out of bounds.
                p_ref[t * C:(t + 1) * C, :] = x2d
            else:
                valid = ((hh + dh >= 0) & (hh + dh < H) &
                         (ww + dw >= 0) & (ww + dw < W))      # (1, HW)
                # Destination column p reads source column (p + s) mod HW.
                p_ref[t * C:(t + 1) * C, :HW - s] = jnp.where(
                    valid[:, :HW - s], x2d[:, s:], 0.0)
                p_ref[t * C:(t + 1) * C, HW - s:] = jnp.where(
                    valid[:, HW - s:], x2d[:, :s], 0.0)

    # One fat MXU matmul over all 9 taps: (Cout, 9C) @ (9C, HW) -> (Cout, HW).
    acc = jnp.dot(w_ref[...], p_ref[...], preferred_element_type=jnp.float32)
    acc = acc + b_ref[...]                       # bias, broadcast over lanes

    alpha = alpha_ref[0, 0]
    acc = jnp.where(acc > 0, acc, alpha * acc)   # PReLU (single shared slope)

    o_ref[...] = acc.reshape(1, *acc.shape).astype(o_ref.dtype)


def upsample_block(x, weight, bias, alpha, scale_factor):
    """x: (N, C, H, W) float32; weight: (C*r^2, C, 3, 3); bias: (C*r^2,).

    Returns PReLU(PixelShuffle(Conv2d(x))) of shape (N, C, H*r, W*r),
    matching the PyTorch UpsampleBlock forward (NCHW in / NCHW out).
    """
    N, C, H, W = x.shape
    r = scale_factor
    Cout = C * r * r
    HW = H * W
    assert weight.shape == (Cout, C, 3, 3)

    # Metadata-only reshape: NCHW -> channels-first with flattened pixels.
    x_flat = x.reshape(N, C, HW)

    # (Cout, Cin, 3, 3) -> (Cout, 9*Cin), columns ordered (kh, kw, ci).
    w2d = jnp.transpose(weight, (0, 2, 3, 1)).reshape(Cout, 9 * C)
    b2d = bias.reshape(Cout, 1).astype(jnp.float32)
    alpha2d = jnp.asarray(alpha, jnp.float32).reshape(1, 1)

    # Row / column index of every flattened pixel (used for halo masking).
    pix = jnp.arange(HW, dtype=jnp.int32)
    hh = (pix // W).reshape(1, HW)
    ww = (pix % W).reshape(1, HW)

    kernel = functools.partial(_conv3x3_prelu_kernel, H=H, W=W)

    flops = 2 * N * HW * 9 * C * Cout
    bytes_accessed = 4 * (x_flat.size + w2d.size + b2d.size +
                          hh.size + ww.size + N * Cout * HW)

    # TODO(synk): for large images (e.g. C=64, H=W>=128) add an H-tile grid
    # axis with a 2-row halo so input + im2col + output blocks stay well under
    # v7x's 64 MiB VMEM; the toy/test shapes fit a whole image per step.
    conv_flat = pl.pallas_call(
        kernel,
        out_shape=jax.ShapeDtypeStruct((N, Cout, HW), x.dtype),
        grid_spec=pltpu.PrefetchScalarGridSpec(
            num_scalar_prefetch=0,
            grid=(N,),
            in_specs=[
                pl.BlockSpec((1, C, HW), lambda n: (n, 0, 0)),      # x
                pl.BlockSpec((Cout, 9 * C), lambda n: (0, 0)),      # weights
                pl.BlockSpec((Cout, 1), lambda n: (0, 0)),          # bias
                pl.BlockSpec((1, HW), lambda n: (0, 0)),            # hh
                pl.BlockSpec((1, HW), lambda n: (0, 0)),            # ww
                pl.BlockSpec(memory_space=pltpu.MemorySpace.SMEM),  # alpha
            ],
            out_specs=pl.BlockSpec((1, Cout, HW), lambda n: (n, 0, 0)),
            scratch_shapes=[pltpu.VMEM((9 * C, HW), x.dtype)],
        ),
        compiler_params=pltpu.CompilerParams(
            dimension_semantics=("parallel",)),
        cost_estimate=pl.CostEstimate(
            flops=flops, transcendentals=0, bytes_accessed=bytes_accessed),
    )(x_flat, w2d, b2d, hh, ww, alpha2d)

    # PixelShuffle(r): (N, C*r*r, H*W) -> (N, C, H*r, W*r).
    # TODO(synk): fuse this permutation into the kernel's store (write the
    # pixel-shuffled layout directly) to drop one full-tensor HBM round trip.
    y = conv_flat.reshape(N, C, r, r, H, W)
    y = jnp.transpose(y, (0, 1, 4, 2, 5, 3)).reshape(N, C, H * r, W * r)
    return y


def reference_jax(x, weight, bias, alpha, scale_factor):
    """Pure-JAX reference (lax conv) for correctness checking."""
    conv = jax.lax.conv_general_dilated(
        x, weight, window_strides=(1, 1), padding=((1, 1), (1, 1)),
        dimension_numbers=("NCHW", "OIHW", "NCHW"))
    conv = conv + bias.reshape(1, -1, 1, 1)
    N, Crr, H, W = conv.shape
    r = scale_factor
    C = Crr // (r * r)
    y = conv.reshape(N, C, r, r, H, W)
    y = jnp.transpose(y, (0, 1, 4, 2, 5, 3)).reshape(N, C, H * r, W * r)
    return jnp.where(y > 0, y, alpha * y)


if __name__ == "__main__":
    key = jax.random.PRNGKey(0)
    k_x, k_w, k_b = jax.random.split(key, 3)

    # Small shapes consistent with the module: batch=2, in_channels=4,
    # spatial=16x16, scaleFactor=2 -> conv out channels = 4 * 2^2 = 16.
    N, C, H, W = 2, 4, 16, 16
    scale = 2
    Cout = C * scale * scale

    x = jax.random.normal(k_x, (N, C, H, W), dtype=jnp.float32)

    # Deterministic parameter init (shapes from nn.Conv2d / nn.PReLU).
    fan_in = C * 3 * 3
    bound = 1.0 / (fan_in ** 0.5)
    weight = jax.random.uniform(k_w, (Cout, C, 3, 3), jnp.float32,
                                minval=-bound, maxval=bound)
    bias = jax.random.uniform(k_b, (Cout,), jnp.float32,
                              minval=-bound, maxval=bound)
    alpha = jnp.float32(0.25)  # nn.PReLU() default: 1 shared param, init 0.25

    out = upsample_block(x, weight, bias, alpha, scale)
    out = jax.block_until_ready(out)

    ref = jax.block_until_ready(reference_jax(x, weight, bias, alpha, scale))
    assert out.shape == (N, C, H * scale, W * scale), out.shape
    assert jnp.allclose(out, ref, atol=1e-4, rtol=1e-4), \
        float(jnp.max(jnp.abs(out - ref)))

    print("KERNEL_OK")
</pallas_src>

<mosaic_0001>
module attributes {stable_mosaic.version = 11 : i64} {
  func.func @_conv3x3_prelu_kernel(%arg0: i32, %arg1: memref<1x4x256xf32, #tpu.memory_space<vmem>>, %arg2: memref<16x36xf32, #tpu.memory_space<vmem>>, %arg3: memref<16x1xf32, #tpu.memory_space<vmem>>, %arg4: memref<1x256xi32, #tpu.memory_space<vmem>>, %arg5: memref<1x256xi32, #tpu.memory_space<vmem>>, %arg6: memref<1x1xf32, #tpu.memory_space<smem>>, %arg7: memref<1x16x256xf32, #tpu.memory_space<vmem>>, %arg8: memref<36x256xf32, #tpu.memory_space<vmem>>) attributes {dimension_semantics = [#tpu.dimension_semantics<parallel>], iteration_bounds = array<i64: 2>, scalar_prefetch = 0 : i64, scratch_operands = 1 : i64, tpu.core_type = #tpu.core_type<tc>, window_params = [{transform_indices = @transform_0, window_bounds = array<i64: 1, 4, 256>}, {pipeline_mode = #tpu.pipeline_mode<synchronous>, transform_indices = @transform_1, window_bounds = array<i64: 16, 36>}, {pipeline_mode = #tpu.pipeline_mode<synchronous>, transform_indices = @transform_2, window_bounds = array<i64: 16, 1>}, {pipeline_mode = #tpu.pipeline_mode<synchronous>, transform_indices = @transform_3, window_bounds = array<i64: 1, 256>}, {pipeline_mode = #tpu.pipeline_mode<synchronous>, transform_indices = @transform_4, window_bounds = array<i64: 1, 256>}, {transform_indices = @transform_5, window_bounds = array<i64: 1, 1>}, {transform_indices = @transform_6, window_bounds = array<i64: 1, 16, 256>}]} {
    %c0 = arith.constant 0 : index
    %c0_0 = arith.constant 0 : index
    %c0_1 = arith.constant 0 : index
    %0 = vector.load %arg1[%c0, %c0_0, %c0_1] : memref<1x4x256xf32, #tpu.memory_space<vmem>>, vector<1x4x256xf32>
    %1 = vector.shape_cast %0 : vector<1x4x256xf32> to vector<4x256xf32>
    %c0_2 = arith.constant 0 : index
    %c0_3 = arith.constant 0 : index
    %2 = vector.load %arg4[%c0_2, %c0_3] : memref<1x256xi32, #tpu.memory_space<vmem>>, vector<1x256xi32>
    %c0_4 = arith.constant 0 : index
    %c0_5 = arith.constant 0 : index
    %3 = vector.load %arg5[%c0_4, %c0_5] : memref<1x256xi32, #tpu.memory_space<vmem>>, vector<1x256xi32>
    %c-1_i32 = arith.constant -1 : i32
    %4 = vector.broadcast %c-1_i32 : i32 to vector<1x256xi32>
    %5 = arith.addi %2, %4 : vector<1x256xi32>
    %c0_i32 = arith.constant 0 : i32
    %6 = vector.broadcast %c0_i32 : i32 to vector<1x256xi32>
    %7 = arith.cmpi sge, %5, %6 : vector<1x256xi32>
    %c-1_i32_6 = arith.constant -1 : i32
    %8 = vector.broadcast %c-1_i32_6 : i32 to vector<1x256xi32>
    %9 = arith.addi %2, %8 : vector<1x256xi32>
    %c16_i32 = arith.constant 16 : i32
    %10 = vector.broadcast %c16_i32 : i32 to vector<1x256xi32>
    %11 = arith.cmpi slt, %9, %10 : vector<1x256xi32>
    %12 = arith.andi %7, %11 : vector<1x256xi1>
    %c-1_i32_7 = arith.constant -1 : i32
    %13 = vector.broadcast %c-1_i32_7 : i32 to vector<1x256xi32>
    %14 = arith.addi %3, %13 : vector<1x256xi32>
    %c0_i32_8 = arith.constant 0 : i32
    %15 = vector.broadcast %c0_i32_8 : i32 to vector<1x256xi32>
    %16 = arith.cmpi sge, %14, %15 : vector<1x256xi32>
    %17 = arith.andi %12, %16 : vector<1x256xi1>
    %c-1_i32_9 = arith.constant -1 : i32
    %18 = vector.broadcast %c-1_i32_9 : i32 to vector<1x256xi32>
    %19 = arith.addi %3, %18 : vector<1x256xi32>
    %c16_i32_10 = arith.constant 16 : i32
    %20 = vector.broadcast %c16_i32_10 : i32 to vector<1x256xi32>
    %21 = arith.cmpi slt, %19, %20 : vector<1x256xi32>
    %22 = arith.andi %17, %21 : vector<1x256xi1>
    %23 = vector.extract_strided_slice %22 {offsets = [0, 0], sizes = [1, 17], strides = [1, 1]} : vector<1x256xi1> to vector<1x17xi1>
    %24 = vector.extract_strided_slice %1 {offsets = [0, 239], sizes = [4, 17], strides = [1, 1]} : vector<4x256xf32> to vector<4x17xf32>
    %cst = arith.constant 0.000000e+00 : f32
    %25 = vector.shape_cast %23 : vector<1x17xi1> to vector<1x17xi1>
    %26 = vector.broadcast %25 : vector<1x17xi1> to vector<4x17xi1>
    %27 = vector.broadcast %cst : f32 to vector<4x17xf32>
    %28 = arith.select %26, %24, %27 : vector<4x17xi1>, vector<4x17xf32>
    %c0_11 = arith.constant 0 : index
    %c0_12 = arith.constant 0 : index
    %29 = vector.load %arg8[%c0_11, %c0_12] : memref<36x256xf32, #tpu.memory_space<vmem>>, vector<4x17xf32>
    tpu.vector_store %arg8[%c0_11, %c0_12], %28 {strides = array<i32>} : memref<36x256xf32, #tpu.memory_space<vmem>>, vector<4x17xf32>,
    %30 = vector.extract_strided_slice %22 {offsets = [0, 17], sizes = [1, 239], strides = [1, 1]} : vector<1x256xi1> to vector<1x239xi1>
    %31 = vector.extract_strided_slice %1 {offsets = [0, 0], sizes = [4, 239], strides = [1, 1]} : vector<4x256xf32> to vector<4x239xf32>
    %cst_13 = arith.constant 0.000000e+00 : f32
    %32 = vector.shape_cast %30 : vector<1x239xi1> to vector<1x239xi1>
    %33 = vector.broadcast %32 : vector<1x239xi1> to vector<4x239xi1>
    %34 = vector.broadcast %cst_13 : f32 to vector<4x239xf32>
    %35 = arith.select %33, %31, %34 : vector<4x239xi1>, vector<4x239xf32>
    %c0_14 = arith.constant 0 : index
    %c17 = arith.constant 17 : index
    %36 = vector.load %arg8[%c0_14, %c17] : memref<36x256xf32, #tpu.memory_space<vmem>>, vector<4x239xf32>
    tpu.vector_store %arg8[%c0_14, %c17], %35 {strides = array<i32>} : memref<36x256xf32, #tpu.memory_space<vmem>>, vector<4x239xf32>,
    %c-1_i32_15 = arith.constant -1 : i32
    %37 = vector.broadcast %c-1_i32_15 : i32 to vector<1x256xi32>
    %38 = arith.addi %2, %37 : vector<1x256xi32>
    %c0_i32_16 = arith.constant 0 : i32
    %39 = vector.broadcast %c0_i32_16 : i32 to vector<1x256xi32>
    %40 = arith.cmpi sge, %38, %39 : vector<1x256xi32>
    %c-1_i32_17 = arith.constant -1 : i32
    %41 = vector.broadcast %c-1_i32_17 : i32 to vector<1x256xi32>
    %42 = arith.addi %2, %41 : vector<1x256xi32>
    %c16_i32_18 = arith.constant 16 : i32
    %43 = vector.broadcast %c16_i32_18 : i32 to vector<1x256xi32>
    %44 = arith.cmpi slt, %42, %43 : vector<1x256xi32>
    %45 = arith.andi %40, %44 : vector<1x256xi1>
    %c0_i32_19 = arith.constant 0 : i32
    %46 = vector.broadcast %c0_i32_19 : i32 to vector<1x256xi32>
    %47 = arith.addi %3, %46 : vector<1x256xi32>
    %c0_i32_20 = arith.constant 0 : i32
    %48 = vector.broadcast %c0_i32_20 : i32 to vector<1x256xi32>
    %49 = arith.cmpi sge, %47, %48 : vector<1x256xi32>
    %50 = arith.andi %45, %49 : vector<1x256xi1>
    %c0_i32_21 = arith.constant 0 : i32
    %51 = vector.broadcast %c0_i32_21 : i32 to vector<1x256xi32>
    %52 = arith.addi %3, %51 : vector<1x256xi32>
    %c16_i32_22 = arith.constant 16 : i32
    %53 = vector.broadcast %c16_i32_22 : i32 to vector<1x256xi32>
    %54 = arith.cmpi slt, %52, %53 : vector<1x256xi32>
    %55 = arith.andi %50, %54 : vector<1x256xi1>
    %56 = vector.extract_strided_slice %55 {offsets = [0, 0], sizes = [1, 16], strides = [1, 1]} : vector<1x256xi1> to vector<1x16xi1>
    %57 = vector.extract_strided_slice %1 {offsets = [0, 240], sizes = [4, 16], strides = [1, 1]} : vector<4x256xf32> to vector<4x16xf32>
    %cst_23 = arith.constant 0.000000e+00 : f32
    %58 = vector.shape_cast %56 : vector<1x16xi1> to vector<1x16xi1>
    %59 = vector.broadcast %58 : vector<1x16xi1> to vector<4x16xi1>
    %60 = vector.broadcast %cst_23 : f32 to vector<4x16xf32>
    %61 = arith.select %59, %57, %60 : vector<4x16xi1>, vector<4x16xf32>
    %c4 = arith.constant 4 : index
    %c0_24 = arith.constant 0 : index
    %62 = vector.load %arg8[%c4, %c0_24] : memref<36x256xf32, #tpu.memory_space<vmem>>, vector<4x16xf32>
    tpu.vector_store %arg8[%c4, %c0_24], %61 {strides = array<i32>} : memref<36x256xf32, #tpu.memory_space<vmem>>, vector<4x16xf32>,
    %63 = vector.extract_strided_slice %55 {offsets = [0, 16], sizes = [1, 240], strides = [1, 1]} : vector<1x256xi1> to vector<1x240xi1>
    %64 = vector.extract_strided_slice %1 {offsets = [0, 0], sizes = [4, 240], strides = [1, 1]} : vector<4x256xf32> to vector<4x240xf32>
    %cst_25 = arith.constant 0.000000e+00 : f32
    %65 = vector.shape_cast %63 : vector<1x240xi1> to vector<1x240xi1>
    %66 = vector.broadcast %65 : vector<1x240xi1> to vector<4x240xi1>
    %67 = vector.broadcast %cst_25 : f32 to vector<4x240xf32>
    %68 = arith.select %66, %64, %67 : vector<4x240xi1>, vector<4x240xf32>
    %c4_26 = arith.constant 4 : index
    %c16 = arith.constant 16 : index
    %69 = vector.load %arg8[%c4_26, %c16] : memref<36x256xf32, #tpu.memory_space<vmem>>, vector<4x240xf32>
    tpu.vector_store %arg8[%c4_26, %c16], %68 {strides = array<i32>} : memref<36x256xf32, #tpu.memory_space<vmem>>, vector<4x240xf32>,
    %c-1_i32_27 = arith.constant -1 : i32
    %70 = vector.broadcast %c-1_i32_27 : i32 to vector<1x256xi32>
    %71 = arith.addi %2, %70 : vector<1x256xi32>
    %c0_i32_28 = arith.constant 0 : i32
    %72 = vector.broadcast %c0_i32_28 : i32 to vector<1x256xi32>
    %73 = arith.cmpi sge, %71, %72 : vector<1x256xi32>
    %c-1_i32_29 = arith.constant -1 : i32
    %74 = vector.broadcast %c-1_i32_29 : i32 to vector<1x256xi32>
    %75 = arith.addi %2, %74 : vector<1x256xi32>
    %c16_i32_30 = arith.constant 16 : i32
    %76 = vector.broadcast %c16_i32_30 : i32 to vector<1x256xi32>
    %77 = arith.cmpi slt, %75, %76 : vector<1x256xi32>
    %78 = arith.andi %73, %77 : vector<1x256xi1>
    %c1_i32 = arith.constant 1 : i32
    %79 = vector.broadcast %c1_i32 : i32 to vector<1x256xi32>
    %80 = arith.addi %3, %79 : vector<1x256xi32>
    %c0_i32_31 = arith.constant 0 : i32
    %81 = vector.broadcast %c0_i32_31 : i32 to vector<1x256xi32>
    %82 = arith.cmpi sge, %80, %81 : vector<1x256xi32>
    %83 = arith.andi %78, %82 : vector<1x256xi1>
    %c1_i32_32 = arith.constant 1 : i32
    %84 = vector.broadcast %c1_i32_32 : i32 to vector<1x256xi32>
    %85 = arith.addi %3, %84 : vector<1x256xi32>
    %c16_i32_33 = arith.constant 16 : i32
    %86 = vector.broadcast %c16_i32_33 : i32 to vector<1x256xi32>
    %87 = arith.cmpi slt, %85, %86 : vector<1x256xi32>
    %88 = arith.andi %83, %87 : vector<1x256xi1>
    %89 = vector.extract_strided_slice %88 {offsets = [0, 0], sizes = [1, 15], strides = [1, 1]} : vector<1x256xi1> to vector<1x15xi1>
    %90 = vector.extract_strided_slice %1 {offsets = [0, 241], sizes = [4, 15], strides = [1, 1]} : vector<4x256xf32> to vector<4x15xf32>
    %cst_34 = arith.constant 0.000000e+00 : f32
    %91 = vector.shape_cast %89 : vector<1x15xi1> to vector<1x15xi1>
    %92 = vector.broadcast %91 : vector<1x15xi1> to vector<4x15xi1>
    %93 = vector.broadcast %cst_34 : f32 to vector<4x15xf32>
    %94 = arith.select %92, %90, %93 : vector<4x15xi1>, vector<4x15xf32>
    %c8 = arith.constant 8 : index
    %c0_35 = arith.constant 0 : index
    %95 = vector.load %arg8[%c8, %c0_35] : memref<36x256xf32, #tpu.memory_space<vmem>>, vector<4x15xf32>
    tpu.vector_store %arg8[%c8, %c0_35], %94 {strides = array<i32>} : memref<36x256xf32, #tpu.memory_space<vmem>>, vector<4x15xf32>,
    %96 = vector.extract_strided_slice %88 {offsets = [0, 15], sizes = [1, 241], strides = [1, 1]} : vector<1x256xi1> to vector<1x241xi1>
    %97 = vector.extract_strided_slice %1 {offsets = [0, 0], sizes = [4, 241], strides = [1, 1]} : vector<4x256xf32> to vector<4x241xf32>
    %cst_36 = arith.constant 0.000000e+00 : f32
    %98 = vector.shape_cast %96 : vector<1x241xi1> to vector<1x241xi1>
    %99 = vector.broadcast %98 : vector<1x241xi1> to vector<4x241xi1>
    %100 = vector.broadcast %cst_36 : f32 to vector<4x241xf32>
    %101 = arith.select %99, %97, %100 : vector<4x241xi1>, vector<4x241xf32>
    %c8_37 = arith.constant 8 : index
    %c15 = arith.constant 15 : index
    %102 = vector.load %arg8[%c8_37, %c15] : memref<36x256xf32, #tpu.memory_space<vmem>>, vector<4x241xf32>
    tpu.vector_store %arg8[%c8_37, %c15], %101 {strides = array<i32>} : memref<36x256xf32, #tpu.memory_space<vmem>>, vector<4x241xf32>,
    %c0_i32_38 = arith.constant 0 : i32
    %103 = vector.broadcast %c0_i32_38 : i32 to vector<1x256xi32>
    %104 = arith.addi %2, %103 : vector<1x256xi32>
    %c0_i32_39 = arith.constant 0 : i32
    %105 = vector.broadcast %c0_i32_39 : i32 to vector<1x256xi32>
    %106 = arith.cmpi sge, %104, %105 : vector<1x256xi32>
    %c0_i32_40 = arith.constant 0 : i32
    %107 = vector.broadcast %c0_i32_40 : i32 to vector<1x256xi32>
    %108 = arith.addi %2, %107 : vector<1x256xi32>
    %c16_i32_41 = arith.constant 16 : i32
    %109 = vector.broadcast %c16_i32_41 : i32 to vector<1x256xi32>
    %110 = arith.cmpi slt, %108, %109 : vector<1x256xi32>
    %111 = arith.andi %106, %110 : vector<1x256xi1>
    %c-1_i32_42 = arith.constant -1 : i32
    %112 = vector.broadcast %c-1_i32_42 : i32 to vector<1x256xi32>
    %113 = arith.addi %3, %112 : vector<1x256xi32>
    %c0_i32_43 = arith.constant 0 : i32
    %114 = vector.broadcast %c0_i32_43 : i32 to vector<1x256xi32>
    %115 = arith.cmpi sge, %113, %114 : vector<1x256xi32>
    %116 = arith.andi %111, %115 : vector<1x256xi1>
    %c-1_i32_44 = arith.constant -1 : i32
    %117 = vector.broadcast %c-1_i32_44 : i32 to vector<1x256xi32>
    %118 = arith.addi %3, %117 : vector<1x256xi32>
    %c16_i32_45 = arith.constant 16 : i32
    %119 = vector.broadcast %c16_i32_45 : i32 to vector<1x256xi32>
    %120 = arith.cmpi slt, %118, %119 : vector<1x256xi32>
    %121 = arith.andi %116, %120 : vector<1x256xi1>
    %122 = vector.extract_strided_slice %121 {offsets = [0, 0], sizes = [1, 1], strides = [1, 1]} : vector<1x256xi1> to vector<1x1xi1>
    %123 = vector.extract_strided_slice %1 {offsets = [0, 255], sizes = [4, 1], strides = [1, 1]} : vector<4x256xf32> to vector<4x1xf32>
    %cst_46 = arith.constant 0.000000e+00 : f32
    %124 = vector.shape_cast %122 : vector<1x1xi1> to vector<1x1xi1>
    %125 = vector.broadcast %124 : vector<1x1xi1> to vector<4x1xi1>
    %126 = vector.broadcast %cst_46 : f32 to vector<4x1xf32>
    %127 = arith.select %125, %123, %126 : vector<4x1xi1>, vector<4x1xf32>
    %c12 = arith.constant 12 : index
    %c0_47 = arith.constant 0 : index
    %128 = vector.load %arg8[%c12, %c0_47] : memref<36x256xf32, #tpu.memory_space<vmem>>, vector<4x1xf32>
    tpu.vector_store %arg8[%c12, %c0_47], %127 {strides = array<i32>} : memref<36x256xf32, #tpu.memory_space<vmem>>, vector<4x1xf32>,
    %129 = vector.extract_strided_slice %121 {offsets = [0, 1], sizes = [1, 255], strides = [1, 1]} : vector<1x256xi1> to vector<1x255xi1>
    %130 = vector.extract_strided_slice %1 {offsets = [0, 0], sizes = [4, 255], strides = [1, 1]} : vector<4x256xf32> to vector<4x255xf32>
    %cst_48 = arith.constant 0.000000e+00 : f32
    %131 = vector.shape_cast %129 : vector<1x255xi1> to vector<1x255xi1>
    %132 = vector.broadcast %131 : vector<1x255xi1> to vector<4x255xi1>
    %133 = vector.broadcast %cst_48 : f32 to vector<4x255xf32>
    %134 = arith.select %132, %130, %133 : vector<4x255xi1>, vector<4x255xf32>
    %c12_49 = arith.constant 12 : index
    %c1 = arith.constant 1 : index
    %135 = vector.load %arg8[%c12_49, %c1] : memref<36x256xf32, #tpu.memory_space<vmem>>, vector<4x255xf32>
    tpu.vector_store %arg8[%c12_49, %c1], %134 {strides = array<i32>} : memref<36x256xf32, #tpu.memory_space<vmem>>, vector<4x255xf32>,
    %c16_50 = arith.constant 16 : index
    %c0_51 = arith.constant 0 : index
    %136 = vector.load %arg8[%c16_50, %c0_51] : memref<36x256xf32, #tpu.memory_space<vmem>>, vector<4x256xf32>
    tpu.vector_store %arg8[%c16_50, %c0_51], %1 {strides = array<i32>} : memref<36x256xf32, #tpu.memory_space<vmem>>, vector<4x256xf32>,
    %c0_i32_52 = arith.constant 0 : i32
    %137 = vector.broadcast %c0_i32_52 : i32 to vector<1x256xi32>
    %138 = arith.addi %2, %137 : vector<1x256xi32>
    %c0_i32_53 = arith.constant 0 : i32
    %139 = vector.broadcast %c0_i32_53 : i32 to vector<1x256xi32>
    %140 = arith.cmpi sge, %138, %139 : vector<1x256xi32>
    %c0_i32_54 = arith.constant 0 : i32
    %141 = vector.broadcast %c0_i32_54 : i32 to vector<1x256xi32>
    %142 = arith.addi %2, %141 : vector<1x256xi32>
    %c16_i32_55 = arith.constant 16 : i32
    %143 = vector.broadcast %c16_i32_55 : i32 to vector<1x256xi32>
    %144 = arith.cmpi slt, %142, %143 : vector<1x256xi32>
    %145 = arith.andi %140, %144 : vector<1x256xi1>
    %c1_i32_56 = arith.constant 1 : i32
    %146 = vector.broadcast %c1_i32_56 : i32 to vector<1x256xi32>
    %147 = arith.addi %3, %146 : vector<1x256xi32>
    %c0_i32_57 = arith.constant 0 : i32
    %148 = vector.broadcast %c0_i32_57 : i32 to vector<1x256xi32>
    %149 = arith.cmpi sge, %147, %148 : vector<1x256xi32>
    %150 = arith.andi %145, %149 : vector<1x256xi1>
    %c1_i32_58 = arith.constant 1 : i32
    %151 = vector.broadcast %c1_i32_58 : i32 to vector<1x256xi32>
    %152 = arith.addi %3, %151 : vector<1x256xi32>
    %c16_i32_59 = arith.constant 16 : i32
    %153 = vector.broadcast %c16_i32_59 : i32 to vector<1x256xi32>
    %154 = arith.cmpi slt, %152, %153 : vector<1x256xi32>
    %155 = arith.andi %150, %154 : vector<1x256xi1>
    %156 = vector.extract_strided_slice %155 {offsets = [0, 0], sizes = [1, 255], strides = [1, 1]} : vector<1x256xi1> to vector<1x255xi1>
    %157 = vector.extract_strided_slice %1 {offsets = [0, 1], sizes = [4, 255], strides = [1, 1]} : vector<4x256xf32> to vector<4x255xf32>
    %cst_60 = arith.constant 0.000000e+00 : f32
    %158 = vector.shape_cast %156 : vector<1x255xi1> to vector<1x255xi1>
    %159 = vector.broadcast %158 : vector<1x255xi1> to vector<4x255xi1>
    %160 = vector.broadcast %cst_60 : f32 to vector<4x255xf32>
    %161 = arith.select %159, %157, %160 : vector<4x255xi1>, vector<4x255xf32>
    %c20 = arith.constant 20 : index
    %c0_61 = arith.constant 0 : index
    %162 = vector.load %arg8[%c20, %c0_61] : memref<36x256xf32, #tpu.memory_space<vmem>>, vector<4x255xf32>
    tpu.vector_store %arg8[%c20, %c0_61], %161 {strides = array<i32>} : memref<36x256xf32, #tpu.memory_space<vmem>>, vector<4x255xf32>,
    %163 = vector.extract_strided_slice %155 {offsets = [0, 255], sizes = [1, 1], strides = [1, 1]} : vector<1x256xi1> to vector<1x1xi1>
    %164 = vector.extract_strided_slice %1 {offsets = [0, 0], sizes = [4, 1], strides = [1, 1]} : vector<4x256xf32> to vector<4x1xf32>
    %cst_62 = arith.constant 0.000000e+00 : f32
    %165 = vector.shape_cast %163 : vector<1x1xi1> to vector<1x1xi1>
    %166 = vector.broadcast %165 : vector<1x1xi1> to vector<4x1xi1>
    %167 = vector.broadcast %cst_62 : f32 to vector<4x1xf32>
    %168 = arith.select %166, %164, %167 : vector<4x1xi1>, vector<4x1xf32>
    %c20_63 = arith.constant 20 : index
    %c255 = arith.constant 255 : index
    %169 = vector.load %arg8[%c20_63, %c255] : memref<36x256xf32, #tpu.memory_space<vmem>>, vector<4x1xf32>
    tpu.vector_store %arg8[%c20_63, %c255], %168 {strides = array<i32>} : memref<36x256xf32, #tpu.memory_space<vmem>>, vector<4x1xf32>,
    %c1_i32_64 = arith.constant 1 : i32
    %170 = vector.broadcast %c1_i32_64 : i32 to vector<1x256xi32>
    %171 = arith.addi %2, %170 : vector<1x256xi32>
    %c0_i32_65 = arith.constant 0 : i32
    %172 = vector.broadcast %c0_i32_65 : i32 to vector<1x256xi32>
    %173 = arith.cmpi sge, %171, %172 : vector<1x256xi32>
    %c1_i32_66 = arith.constant 1 : i32
    %174 = vector.broadcast %c1_i32_66 : i32 to vector<1x256xi32>
    %175 = arith.addi %2, %174 : vector<1x256xi32>
    %c16_i32_67 = arith.constant 16 : i32
    %176 = vector.broadcast %c16_i32_67 : i32 to vector<1x256xi32>
    %177 = arith.cmpi slt, %175, %176 : vector<1x256xi32>
    %178 = arith.andi %173, %177 : vector<1x256xi1>
    %c-1_i32_68 = arith.constant -1 : i32
    %179 = vector.broadcast %c-1_i32_68 : i32 to vector<1x256xi32>
    %180 = arith.addi %3, %179 : vector<1x256xi32>
    %c0_i32_69 = arith.constant 0 : i32
    %181 = vector.broadcast %c0_i32_69 : i32 to vector<1x256xi32>
    %182 = arith.cmpi sge, %180, %181 : vector<1x256xi32>
    %183 = arith.andi %178, %182 : vector<1x256xi1>
    %c-1_i32_70 = arith.constant -1 : i32
    %184 = vector.broadcast %c-1_i32_70 : i32 to vector<1x256xi32>
    %185 = arith.addi %3, %184 : vector<1x256xi32>
    %c16_i32_71 = arith.constant 16 : i32
    %186 = vector.broadcast %c16_i32_71 : i32 to vector<1x256xi32>
    %187 = arith.cmpi slt, %185, %186 : vector<1x256xi32>
    %188 = arith.andi %183, %187 : vector<1x256xi1>
    %189 = vector.extract_strided_slice %188 {offsets = [0, 0], sizes = [1, 241], strides = [1, 1]} : vector<1x256xi1> to vector<1x241xi1>
    %190 = vector.extract_strided_slice %1 {offsets = [0, 15], sizes = [4, 241], strides = [1, 1]} : vector<4x256xf32> to vector<4x241xf32>
    %cst_72 = arith.constant 0.000000e+00 : f32
    %191 = vector.shape_cast %189 : vector<1x241xi1> to vector<1x241xi1>
    %192 = vector.broadcast %191 : vector<1x241xi1> to vector<4x241xi1>
    %193 = vector.broadcast %cst_72 : f32 to vector<4x241xf32>
    %194 = arith.select %192, %190, %193 : vector<4x241xi1>, vector<4x241xf32>
    %c24 = arith.constant 24 : index
    %c0_73 = arith.constant 0 : index
    %195 = vector.load %arg8[%c24, %c0_73] : memref<36x256xf32, #tpu.memory_space<vmem>>, vector<4x241xf32>
    tpu.vector_store %arg8[%c24, %c0_73], %194 {strides = array<i32>} : memref<36x256xf32, #tpu.memory_space<vmem>>, vector<4x241xf32>,
    %196 = vector.extract_strided_slice %188 {offsets = [0, 241], sizes = [1, 15], strides = [1, 1]} : vector<1x256xi1> to vector<1x15xi1>
    %197 = vector.extract_strided_slice %1 {offsets = [0, 0], sizes = [4, 15], strides = [1, 1]} : vector<4x256xf32> to vector<4x15xf32>
    %cst_74 = arith.constant 0.000000e+00 : f32
    %198 = vector.shape_cast %196 : vector<1x15xi1> to vector<1x15xi1>
    %199 = vector.broadcast %198 : vector<1x15xi1> to vector<4x15xi1>
    %200 = vector.broadcast %cst_74 : f32 to vector<4x15xf32>
    %201 = arith.select %199, %197, %200 : vector<4x15xi1>, vector<4x15xf32>
    %c24_75 = arith.constant 24 : index
    %c241 = arith.constant 241 : index
    %202 = vector.load %arg8[%c24_75, %c241] : memref<36x256xf32, #tpu.memory_space<vmem>>, vector<4x15xf32>
    tpu.vector_store %arg8[%c24_75, %c241], %201 {strides = array<i32>} : memref<36x256xf32, #tpu.memory_space<vmem>>, vector<4x15xf32>,
    %c1_i32_76 = arith.constant 1 : i32
    %203 = vector.broadcast %c1_i32_76 : i32 to vector<1x256xi32>
    %204 = arith.addi %2, %203 : vector<1x256xi32>
    %c0_i32_77 = arith.constant 0 : i32
    %205 = vector.broadcast %c0_i32_77 : i32 to vector<1x256xi32>
    %206 = arith.cmpi sge, %204, %205 : vector<1x256xi32>
    %c1_i32_78 = arith.constant 1 : i32
    %207 = vector.broadcast %c1_i32_78 : i32 to vector<1x256xi32>
    %208 = arith.addi %2, %207 : vector<1x256xi32>
    %c16_i32_79 = arith.constant 16 : i32
    %209 = vector.broadcast %c16_i32_79 : i32 to vector<1x256xi32>
    %210 = arith.cmpi slt, %208, %209 : vector<1x256xi32>
    %211 = arith.andi %206, %210 : vector<1x256xi1>
    %c0_i32_80 = arith.constant 0 : i32
    %212 = vector.broadcast %c0_i32_80 : i32 to vector<1x256xi32>
    %213 = arith.addi %3, %212 : vector<1x256xi32>
    %c0_i32_81 = arith.constant 0 : i32
    %214 = vector.broadcast %c0_i32_81 : i32 to vector<1x256xi32>
    %215 = arith.cmpi sge, %213, %214 : vector<1x256xi32>
    %216 = arith.andi %211, %215 : vector<1x256xi1>
    %c0_i32_82 = arith.constant 0 : i32
    %217 = vector.broadcast %c0_i32_82 : i32 to vector<1x256xi32>
    %218 = arith.addi %3, %217 : vector<1x256xi32>
    %c16_i32_83 = arith.constant 16 : i32
    %219 = vector.broadcast %c16_i32_83 : i32 to vector<1x256xi32>
    %220 = arith.cmpi slt, %218, %219 : vector<1x256xi32>
    %221 = arith.andi %216, %220 : vector<1x256xi1>
    %222 = vector.extract_strided_slice %221 {offsets = [0, 0], sizes = [1, 240], strides = [1, 1]} : vector<1x256xi1> to vector<1x240xi1>
    %223 = vector.extract_strided_slice %1 {offsets = [0, 16], sizes = [4, 240], strides = [1, 1]} : vector<4x256xf32> to vector<4x240xf32>
    %cst_84 = arith.constant 0.000000e+00 : f32
    %224 = vector.shape_cast %222 : vector<1x240xi1> to vector<1x240xi1>
    %225 = vector.broadcast %224 : vector<1x240xi1> to vector<4x240xi1>
    %226 = vector.broadcast %cst_84 : f32 to vector<4x240xf32>
    %227 = arith.select %225, %223, %226 : vector<4x240xi1>, vector<4x240xf32>
    %c28 = arith.constant 28 : index
    %c0_85 = arith.constant 0 : index
    %228 = vector.load %arg8[%c28, %c0_85] : memref<36x256xf32, #tpu.memory_space<vmem>>, vector<4x240xf32>
    tpu.vector_store %arg8[%c28, %c0_85], %227 {strides = array<i32>} : memref<36x256xf32, #tpu.memory_space<vmem>>, vector<4x240xf32>,
    %229 = vector.extract_strided_slice %221 {offsets = [0, 240], sizes = [1, 16], strides = [1, 1]} : vector<1x256xi1> to vector<1x16xi1>
    %230 = vector.extract_strided_slice %1 {offsets = [0, 0], sizes = [4, 16], strides = [1, 1]} : vector<4x256xf32> to vector<4x16xf32>
    %cst_86 = arith.constant 0.000000e+00 : f32
    %231 = vector.shape_cast %229 : vector<1x16xi1> to vector<1x16xi1>
    %232 = vector.broadcast %231 : vector<1x16xi1> to vector<4x16xi1>
    %233 = vector.broadcast %cst_86 : f32 to vector<4x16xf32>
    %234 = arith.select %232, %230, %233 : vector<4x16xi1>, vector<4x16xf32>
    %c28_87 = arith.constant 28 : index
    %c240 = arith.constant 240 : index
    %235 = vector.load %arg8[%c28_87, %c240] : memref<36x256xf32, #tpu.memory_space<vmem>>, vector<4x16xf32>
    tpu.vector_store %arg8[%c28_87, %c240], %234 {strides = array<i32>} : memref<36x256xf32, #tpu.memory_space<vmem>>, vector<4x16xf32>,
    %c1_i32_88 = arith.constant 1 : i32
    %236 = vector.broadcast %c1_i32_88 : i32 to vector<1x256xi32>
    %237 = arith.addi %2, %236 : vector<1x256xi32>
    %c0_i32_89 = arith.constant 0 : i32
    %238 = vector.broadcast %c0_i32_89 : i32 to vector<1x256xi32>
    %239 = arith.cmpi sge, %237, %238 : vector<1x256xi32>
    %c1_i32_90 = arith.constant 1 : i32
    %240 = vector.broadcast %c1_i32_90 : i32 to vector<1x256xi32>
    %241 = arith.addi %2, %240 : vector<1x256xi32>
    %c16_i32_91 = arith.constant 16 : i32
    %242 = vector.broadcast %c16_i32_91 : i32 to vector<1x256xi32>
    %243 = arith.cmpi slt, %241, %242 : vector<1x256xi32>
    %244 = arith.andi %239, %243 : vector<1x256xi1>
    %c1_i32_92 = arith.constant 1 : i32
    %245 = vector.broadcast %c1_i32_92 : i32 to vector<1x256xi32>
    %246 = arith.addi %3, %245 : vector<1x256xi32>
    %c0_i32_93 = arith.constant 0 : i32
    %247 = vector.broadcast %c0_i32_93 : i32 to vector<1x256xi32>
    %248 = arith.cmpi sge, %246, %247 : vector<1x256xi32>
    %249 = arith.andi %244, %248 : vector<1x256xi1>
    %c1_i32_94 = arith.constant 1 : i32
    %250 = vector.broadcast %c1_i32_94 : i32 to vector<1x256xi32>
    %251 = arith.addi %3, %250 : vector<1x256xi32>
    %c16_i32_95 = arith.constant 16 : i32
    %252 = vector.broadcast %c16_i32_95 : i32 to vector<1x256xi32>
    %253 = arith.cmpi slt, %251, %252 : vector<1x256xi32>
    %254 = arith.andi %249, %253 : vector<1x256xi1>
    %255 = vector.extract_strided_slice %254 {offsets = [0, 0], sizes = [1, 239], strides = [1, 1]} : vector<1x256xi1> to vector<1x239xi1>
    %256 = vector.extract_strided_slice %1 {offsets = [0, 17], sizes = [4, 239], strides = [1, 1]} : vector<4x256xf32> to vector<4x239xf32>
    %cst_96 = arith.constant 0.000000e+00 : f32
    %257 = vector.shape_cast %255 : vector<1x239xi1> to vector<1x239xi1>
    %258 = vector.broadcast %257 : vector<1x239xi1> to vector<4x239xi1>
    %259 = vector.broadcast %cst_96 : f32 to vector<4x239xf32>
    %260 = arith.select %258, %256, %259 : vector<4x239xi1>, vector<4x239xf32>
    %c32 = arith.constant 32 : index
    %c0_97 = arith.constant 0 : index
    %261 = vector.load %arg8[%c32, %c0_97] : memref<36x256xf32, #tpu.memory_space<vmem>>, vector<4x239xf32>
    tpu.vector_store %arg8[%c32, %c0_97], %260 {strides = array<i32>} : memref<36x256xf32, #tpu.memory_space<vmem>>, vector<4x239xf32>,
    %262 = vector.extract_strided_slice %254 {offsets = [0, 239], sizes = [1, 17], strides = [1, 1]} : vector<1x256xi1> to vector<1x17xi1>
    %263 = vector.extract_strided_slice %1 {offsets = [0, 0], sizes = [4, 17], strides = [1, 1]} : vector<4x256xf32> to vector<4x17xf32>
    %cst_98 = arith.constant 0.000000e+00 : f32
    %264 = vector.shape_cast %262 : vector<1x17xi1> to vector<1x17xi1>
    %265 = vector.broadcast %264 : vector<1x17xi1> to vector<4x17xi1>
    %266 = vector.broadcast %cst_98 : f32 to vector<4x17xf32>
    %267 = arith.select %265, %263, %266 : vector<4x17xi1>, vector<4x17xf32>
    %c32_99 = arith.constant 32 : index
    %c239 = arith.constant 239 : index
    %268 = vector.load %arg8[%c32_99, %c239] : memref<36x256xf32, #tpu.memory_space<vmem>>, vector<4x17xf32>
    tpu.vector_store %arg8[%c32_99, %c239], %267 {strides = array<i32>} : memref<36x256xf32, #tpu.memory_space<vmem>>, vector<4x17xf32>,
    %c0_100 = arith.constant 0 : index
    %c0_101 = arith.constant 0 : index
    %269 = vector.load %arg2[%c0_100, %c0_101] : memref<16x36xf32, #tpu.memory_space<vmem>>, vector<16x36xf32>
    %c0_102 = arith.constant 0 : index
    %c0_103 = arith.constant 0 : index
    %270 = vector.load %arg8[%c0_102, %c0_103] : memref<36x256xf32, #tpu.memory_space<vmem>>, vector<36x256xf32>
    %cst_104 = arith.constant dense<0.000000e+00> : vector<16x256xf32>
    %271 = tpu.matmul %269, %270, %cst_104 {dimension_numbers = #tpu.dot_dimension_numbers<[1], [0], [0], [1], [0, 0, 1, 1], [], []>} : vector<16x36xf32>, vector<36x256xf32>, vector<16x256xf32> -> vector<16x256xf32>
    %c0_105 = arith.constant 0 : index
    %c0_106 = arith.constant 0 : index
    %272 = vector.load %arg3[%c0_105, %c0_106] : memref<16x1xf32, #tpu.memory_space<vmem>>, vector<16x1xf32>
    %273 = vector.broadcast %272 : vector<16x1xf32> to vector<16x256xf32>
    %274 = arith.addf %271, %273 : vector<16x256xf32>
    %c0_107 = arith.constant 0 : index
    %c0_108 = arith.constant 0 : index
    %275 = memref.load %arg6[%c0_107, %c0_108] : memref<1x1xf32, #tpu.memory_space<smem>>
    %cst_109 = arith.constant 0.000000e+00 : f32
    %276 = vector.broadcast %cst_109 : f32 to vector<16x256xf32>
    %277 = arith.cmpf ogt, %274, %276 : vector<16x256xf32>
    %278 = vector.broadcast %275 : f32 to vector<16x256xf32>
    %279 = arith.mulf %278, %274 : vector<16x256xf32>
    %280 = arith.select %277, %274, %279 : vector<16x256xi1>, vector<16x256xf32>
    %281 = vector.shape_cast %280 : vector<16x256xf32> to vector<1x16x256xf32>
    %c0_110 = arith.constant 0 : index
    %c0_111 = arith.constant 0 : index
    %c0_112 = arith.constant 0 : index
    %282 = vector.load %arg7[%c0_110, %c0_111, %c0_112] : memref<1x16x256xf32, #tpu.memory_space<vmem>>, vector<1x16x256xf32>
    tpu.vector_store %arg7[%c0_110, %c0_111, %c0_112], %281 {strides = array<i32>} : memref<1x16x256xf32, #tpu.memory_space<vmem>>, vector<1x16x256xf32>,
    return
  }
  func.func @transform_0(%arg0: i32) -> (i32, i32, i32) {
    %c0_i32 = arith.constant 0 : i32
    %c0_i32_0 = arith.constant 0 : i32
    %c0_i32_1 = arith.constant 0 : i32
    return %arg0, %c0_i32, %c0_i32_0 : i32, i32, i32
  }
  func.func @transform_1(%arg0: i32) -> (i32, i32) {
    %c0_i32 = arith.constant 0 : i32
    %c0_i32_0 = arith.constant 0 : i32
    %c0_i32_1 = arith.constant 0 : i32
    return %c0_i32, %c0_i32_0 : i32, i32
  }
  func.func @transform_2(%arg0: i32) -> (i32, i32) {
    %c0_i32 = arith.constant 0 : i32
    %c0_i32_0 = arith.constant 0 : i32
    %c0_i32_1 = arith.constant 0 : i32
    return %c0_i32, %c0_i32_0 : i32, i32
  }
  func.func @transform_3(%arg0: i32) -> (i32, i32) {
    %c0_i32 = arith.constant 0 : i32
    %c0_i32_0 = arith.constant 0 : i32
    %c0_i32_1 = arith.constant 0 : i32
    return %c0_i32, %c0_i32_0 : i32, i32
  }
  func.func @transform_4(%arg0: i32) -> (i32, i32) {
    %c0_i32 = arith.constant 0 : i32
    %c0_i32_0 = arith.constant 0 : i32
    %c0_i32_1 = arith.constant 0 : i32
    return %c0_i32, %c0_i32_0 : i32, i32
  }
  func.func @transform_5(%arg0: i32) -> (i32, i32) {
    %c0_i32 = arith.constant 0 : i32
    %c0_i32_0 = arith.constant 0 : i32
    %c0_i32_1 = arith.constant 0 : i32
    return %c0_i32, %c0_i32_0 : i32, i32
  }
  func.func @transform_6(%arg0: i32) -> (i32, i32, i32) {
    %c0_i32 = arith.constant 0 : i32
    %c0_i32_0 = arith.constant 0 : i32
    %c0_i32_1 = arith.constant 0 : i32
    return %arg0, %c0_i32, %c0_i32_0 : i32, i32, i32
  }
}

</mosaic_0001>

<bundles_post_ra>
// kernel: tpu_custom_call.1
= control target key start
LH: loop header
LB: loop body
LE: loop exit
PB: predicated region body
PF: predicated region fallthrough
CT: control target
= control target key end

     0   :  { %s1486_s0 = inlined_call_operand.vmem [shape: f32[2,4,256], index: 0, kind: input, shape index: {}]   ;;  %s1487_s1 = inlined_call_operand.hbm [shape: f32[16,36], index: 1, kind: input, shape index: {}]   ;;  %s1488_s2 = inlined_call_operand.vmem [shape: f32[16,1], index: 2, kind: input, shape index: {}]   ;;  %s1489_s3 = inlined_call_operand.vmem [shape: s32[1,256], index: 3, kind: input, shape index: {}]   ;;  %s1490_s4 = inlined_call_operand.vmem [shape: s32[1,256], index: 4, kind: input, shape index: {}]   ;;  %s1491_s5 = inlined_call_operand.<no memory space> [shape: f32[1,1], index: 5, kind: input, shape index: {}]   ;;  %s1492_s6 = inlined_call_operand.hbm [shape: f32[2,16,256], index: 6, kind: output, shape index: {}]  }
   0x1   :  { %11 = sst [smem:[#allocation3]] %s1491_s5 }
   0x2   :  { %12 = vsyncpa [#allocation5], 0 }
   0x3   :  { %13 = vsyncpa [#allocation6], 0 }
   0x4   :  { %15 = vsyncpa [#allocation6 + $0x1], 0  ;;  %s1087_s23 = smov 0   ;;  %s1089_s24 = smov 0  }
   0x5   :  { %s1091_s25 = smov 0   ;;  %s1093_s26 = smov 0  }
   0x6 LB: > { %s1108_s5 = sadd.s32 4294967295, %s1032_s26   ;;  %s838_s27 = sadd.s32 4294967294, %s1032_s26   ;;  %s1032_s26 = sphi %s1093_s26, %s1542_s26   ;;  %s1028_s25 = sphi %s1091_s25, %s1541_s25   ;;  %s1024_s24 = sphi %s1089_s24, %s1540_s24   ;;  %s1020_s23 = sphi %s1087_s23, %s1539_s23  }
   0x7   : > { %s1112_s28 = sadd.s32 1, %s1032_s26   ;;  %s159_s29 = sadd.s32 1, %s1028_s25 }
   0x8   : > { %s156_s30 = ssub.s32 %s1032_s26, %s1112_s28  ;;  %p169_p0 = scmp.ne.s32.totalorder %s1028_s25, %s1024_s24 }
   0x9   : > { %p157_p1 = scmp.eq.s32.totalorder %s156_s30, 0  ;;  %p170_p2 = scmp.eq.s32.totalorder %s1108_s5, 1 }
   0xa   : > { %p175_p3 = scmp.ne.s32.totalorder %s1024_s24, %s1020_s23  ;;  %p176_p4 = scmp.eq.s32.totalorder %s838_s27, 1 }
   0xb   : > { %s1123_s7 = scalar_select %p157_p1, %s1028_s25, %s159_s29  }
   0xc   : > { %p1125_p5 = por %p170_p2, %p169_p0  ;;  %p1129_p6 = por %p176_p4, %p175_p3 }
   0xd   : > { %p839_p7 = scmp.ge.s32.totalorder %s1032_s26, 1  ;;  %p183_p8 = scmp.lt.s32.totalorder %s1032_s26, 3 }
   0xe   : > { %s1496_s8 = scalar_select %p1125_p5, 1, 0 }
   0xf   : > { %s1497_s9 = scalar_select %p1129_p6, 1, 0 }
  0x10   : > { %p1493_p9 = scmp.eq.s32.totalorder %s1108_s5, 0  ;;  %p1136_p10 = pnand %p839_p7, %p183_p8 }
  0x11   : > { %s1034_s11 = smov [#allocation4]   ;;  %s938_s16 = scalar_lea.hbm %s1487_s1, 256 }
  0x12   : > { %s1498_s10 = scalar_select %p1136_p10, 1, 0 }
  0x13   : > { %s195_s12 = sshll.u32 %s1034_s11, 4  ;;  %p878_p11 = pneg %p1136_p10  ;;  %s196_s12 = int_to_ptr.vmem [resolvable:$true] %s195_s12 }
  0x14   : > { %p939_p13 = scmp.ne.s32.totalorder %s1487_s1, %s938_s16  ;;  %p945_p3 = scmp.lt.u32.totalorder %s938_s16, %s1487_s1 }
  0x15   : > { %p1144_p12 = pnand %p1493_p9, %p878_p11 }
  0x17   : > { %p940_p0 = pneg %p1144_p12 }
  0x19   : > { %p941_p1 = pnand %p940_p0, %p939_p13 }
  0x1b   : > { %p942_p2 = pneg %p941_p1 }
  0x1d   : > { %p947_p4 = pnand %p945_p3, %p942_p2 }
  0x1f   : > { %950 = shalt.err (!%p947_p4)
}
  0x20   : > { %s951_s21 = scalar_lea.vmem %s196_s12, 256  ;;  %p959_p9 = scmp.lt.s32.totalorder %s196_s12, %s196_s12 }
  0x21   : > { %p952_p7 = scmp.ne.s32.totalorder %s196_s12, %s951_s21  ;;  %p960_p6 = scmp.lt.s32.totalorder %s951_s21, %s951_s21 }
  0x23   : > { %p954_p8 = pnand %p952_p7, %p940_p0  ;;  %p961_p5 = por %p960_p6, %p959_p9 }
  0x25   : > { %p955_p11 = pneg %p954_p8 }
  0x27   : > { %p962_p10 = pnand %p961_p5, %p955_p11 }
  0x29   : > { %965 = shalt.err (!%p962_p10)
}
  0x2a   : > { %s1035_s22 = smov 128   ;;  %s1036_s27 = smov 8  }
  0x2b   : > { %881 = dma.hbm_to_vmem [thread:$0]  (!%p1144_p12), %s1487_s1, 256, %s196_s12, [#allocation5], %s1035_s22, %s1035_s22, %s1036_s27  }
  0x2c   : > { %p1500_p13 = scmp.ne.s32.totalorder %s1498_s10, 0 }
  0x2d   : > { %p1501_p1 = scmp.eq.s32.totalorder (!%p1500_p13), %s1108_s5, 0 }
  0x2e   : > { %231 = sbr.rel (%p1500_p13) target bundleno = 557 (0x22d), region = 44 }
  0x35   : > { %1011 = dma.done.wait (%p1501_p1), [#allocation5], 256   ;;  %p1502_p0 = pmov %p1501_p1 }
  0x36   : > { %v1037_v0 = vmov 0   ;;  %p261_p5 = scmp.lt.s32.totalorder %s1108_s5, 1  ;;  %v267_v1 = vld [vmem:[%s1489_s3] sm:$0x3]  ;;  %s1038_s19 = smov 1   ;;  %v279_v19 = vlaneseq  ;;  %v1046_v18 = vmov 0.0  }
  0x37   : > { %1013 = vsyncadd (%p1502_p0), [#allocation5], 4294967040  ;;  %936 = vset.pattern.permute.xlu1 %v1037_v0  ;;  %935 = vset.pattern.permute.xlu0 %v1037_v0  ;;  %v268_v2 = vld [vmem:[%s1490_s4] sm:$0x3]  ;;  %vm382_vm0 = vcmp.ge.s32.totalorder %v267_v1, 0  ;;  %vm383_vm1 = vcmp.lt.s32.totalorder %v267_v1, 16 }
  0x38   : > { %s262_s11 = scalar_select %p261_p5, %s1108_s5, 1  ;;  %v273_v3 = vadd.s32 4294967295, %v268_v2  ;;  %v349_v4 = vadd.s32 1, %v268_v2  ;;  %vm384_vm2 = vmand %vm382_vm0, %vm383_vm1  ;;  %v477_v6 = vadd.s32 1, %v267_v1  ;;  %v269_v7 = vadd.s32 4294967295, %v267_v1  ;;  %719 = vmatprep.mubr.f32.mxu0 %v1046_v18  ;;  %725 = vmatprep.mubr.f32.mxu1 %v1046_v18 }
  0x39   : > { %vm308_vm13 = vcmp.ge.s32.totalorder %v268_v2, 0  ;;  %vm310_vm15 = vcmp.lt.s32.totalorder %v268_v2, 16  ;;  %s1039_s20 = smov 15   ;;  %s1040_s21 = smov 16   ;;  %v280_v20 = vshrl.u32 %v279_v19, 7 }
  0x3a   : > { %s856_s13 = sshll.u32 %s262_s11, 3  ;;  %vm350_vm3 = vcmp.ge.s32.totalorder %v349_v4, 0  ;;  %vm352_vm4 = vcmp.lt.s32.totalorder %v349_v4, 16  ;;  %vm478_vm6 = vcmp.ge.s32.totalorder %v477_v6, 0  ;;  %vm479_vm7 = vcmp.lt.s32.totalorder %v477_v6, 16  ;;  %s1041_s22 = smov 17  }
  0x3b   : > { %s265_s18 = scalar_lea.vmem %s1486_s0, %s856_s13  ;;  %vm427_vm5 = vmand %vm384_vm2, %vm350_vm3  ;;  %vm274_vm8 = vcmp.ge.s32.totalorder %v273_v3, 0  ;;  %vm276_vm11 = vcmp.lt.s32.totalorder %v273_v3, 16  ;;  %vm270_vm1 = vcmp.ge.s32.totalorder %v269_v7, 0  ;;  %s1042_s27 = smov 127   ;;  %v1279_v22 = vsub.s32 0, %v280_v20 }
  0x3c   : > { %v1183_v5 = vld [vmem:[%s265_s18] sm:$0xff]  ;;  %vm428_vm9 = vmand %vm427_vm5, %vm352_vm4  ;;  %s1043_s29 = smov 112   ;;  %s1044_s30 = smov 113   ;;  %v1290_v32 = vsub.s32 1, %v280_v20 }
  0x3d   : > { %425 = vst [vmem:[#allocation2 + $0x20] sm:$0xf] %v1183_v5  ;;  %v1190_v8 = vcombine.high %v1183_v5, %v1183_v5  ;;  %v1193_v9 = vsel %vm428_vm9, 1, %v1037_v0  ;;  %vm1196_vm10 = vmand %vm384_vm2, %vm274_vm8  ;;  %vm271_vm2 = vcmp.lt.s32.totalorder %v269_v7, 16  ;;  %s1045_s11 = smov 111   ;;  %s258_s15 = sand.u32 1, %s1024_s24  }
  0x3e   : > { %459 = vrot.lane.b32.xlu0 %v1193_v9, %s1038_s19  ;;  %vm1202_vm12 = vmand %vm478_vm6, %vm479_vm7  ;;  %s732_s16 = sld [smem:[#allocation3]]  ;;  %s844_s17 = sshll.u32 %s258_s15, 5 }
  0x3f   : > { %426 = vst [vmem:[#allocation2 + $0x28] sm:$0xf] %v1190_v8  ;;  %vm481_vm14 = vmand %vm1202_vm12, %vm274_vm8  ;;  %s260_s18 = scalar_lea.vmem [#allocation7], %s844_s17  ;;  %p1537_p9 = scmp.ne.s32.totalorder %s1496_s8, 0 }
  0x40   : > { %vm482_vm0 = vmand %vm481_vm14, %vm276_vm11 }
  0x41   : > { %v1212_v12 = vsel %vm482_vm0, 1, %v1037_v0  ;;  %vm524_vm5 = vmand %vm1202_vm12, %vm308_vm13 }
  0x42   : > { %507 = vrot.lane.b32.xlu1 %v1212_v12, %s1039_s20  ;;  %vm525_vm6 = vmand %vm524_vm5, %vm310_vm15  ;;  %v487_v57 = vrot.slane %v1212_v12, %v1279_v22 }
  0x43   : > { %v1219_v13 = vsel %vm525_vm6, 1, %v1037_v0  ;;  %vm272_vm7 = vmand %vm270_vm1, %vm271_vm2  ;;  %vm325_vm2 = vcmask 130052  }
  0x44   : > { %556 = vrot.lane.b32.xlu0 %v1219_v13, %s1040_s21  ;;  %vm309_vm9 = vmand %vm272_vm7, %vm308_vm13  ;;  %v530_v48 = vrot.slane %v1219_v13, %v1279_v22 }
  0x45   : > { %vm1224_vm14 = vmand %vm309_vm9, %vm310_vm15  ;;  %vm346_vm9 = vcmask 1047684  }
  0x46   : > { %vm574_vm0 = vmand %vm1202_vm12, %vm350_vm3  ;;  %v312_v24 = vsel %vm1224_vm14, 1, %v1037_v0 }
  0x47   : > { %vm575_vm5 = vmand %vm574_vm0, %vm352_vm4  ;;  %v316_v28 = vrot.slane %v312_v24, %v1279_v22  ;;  %v330_v42 = vrot.slane %v312_v24, %v1290_v32 }
  0x48   : > { %v1233_v15 = vsel %vm575_vm5, 1, %v1037_v0  ;;  %318 = vrot.lane.b32.xlu0 %v1190_v8, %s1040_s21  ;;  %vm1240_vm13 = vmand %vm1196_vm10, %vm276_vm11 }
  0x49   : > { %600 = vrot.lane.b32.xlu1 %v1233_v15, %s1041_s22  ;;  %vm275_vm12 = vmand %vm272_vm7, %vm274_vm8  ;;  %v387_v25 = vsel %vm1240_vm13, 1, %v1037_v0  ;;  %vm400_vm13 = vcmask 7172  }
  0x4a   : > { %vm1247_vm15 = vmand %vm275_vm12, %vm276_vm11  ;;  %v391_v33 = vrot.slane %v387_v25, %v1279_v22  ;;  %vm1300_vm11 = vcmp.eq.s32.totalorder %v316_v28, 1  ;;  %v405_v53 = vrot.slane %v387_v25, %v1290_v32  ;;  %vm409_vm12 = vcmask 7168  }
  0x4b   : > { %vm351_vm1 = vmand %vm272_vm7, %vm350_vm3  ;;  %v1296_v35 = vsel %vm1247_vm15, 1, %v1037_v0  ;;  %vm334_vm7 = vcmask 130048  }
  0x4c   : > { %393 = vrot.lane.b32.xlu0 %v1190_v8, %s1038_s19  ;;  %vm1255_vm10 = vmand %vm351_vm1, %vm352_vm4  ;;  %v282_v44 = vrot.slane %v1296_v35, %v1279_v22  ;;  %vm1313_vm0 = vcmp.eq.s32.totalorder %v391_v33, 1  ;;  %vm1326_vm1 = vcmp.eq.s32.totalorder %v330_v42, 1  ;;  %v295_v11 = vrot.slane %v1296_v35, %v1290_v32 }
  0x4d   : > { %332 = vrot.lane.b32.xlu1 %v1183_v5, %s1040_s21  ;;  %v1321_v52 = vsel %vm1255_vm10, 1, %v1037_v0  ;;  %vm1348_vm10 = vcmp.eq.s32.totalorder %v405_v53, 1 }
  0x4e   : > { %v358_v62 = vrot.slane %v1321_v52, %v1279_v22  ;;  %v369_v28 = vrot.slane %v1321_v52, %v1290_v32 }
  0x50   : > { %286 = vrot.lane.b32.xlu0 %v1190_v8, %s1041_s22 }
  0x51   : > { %407 = vrot.lane.b32.xlu1 %v1183_v5, %s1038_s19  ;;  %s764_s19 = sshll.u32 %s260_s18, 4  ;;  %s1435_s19 = int_to_ptr.vmem [resolvable:$true] %s764_s19 }
  0x54   : > { %360 = vrot.lane.b32.xlu0 %v1190_v8, %s1039_s20 }
  0x55   : > { %297 = vrot.lane.b32.xlu1 %v1183_v5, %s1041_s22 }
  0x58   : > { %442 = vrot.lane.b32.xlu0 %v1190_v8, %s1042_s27 }
  0x59   : > { %371 = vrot.lane.b32.xlu1 %v1183_v5, %s1039_s20  ;;  %s857_s20 = sshll.u32 %s1108_s5, 9 }
  0x5a   : > { %s1440_s5 = scalar_lea.hbm %s1492_s6, %s857_s20 }
  0x5c   : > { %440 = vrot.lane.b32.xlu0 %v1183_v5, %s1042_s27 }
  0x5d   : > { %539 = vrot.lane.b32.xlu1 %v1190_v8, %s1043_s29 }
  0x60   : > { %496 = vrot.lane.b32.xlu0 %v1190_v8, %s1044_s30 }
  0x61   : > { %537 = vrot.lane.b32.xlu1 %v1183_v5, %s1043_s29 }
  0x65   : > { %494 = vrot.lane.b32.xlu1 %v1183_v5, %s1044_s30 }
  0xb0   : > { %v460_v21 = vpop.permute.xlu0 %459 }
  0xb1   : > { %v461_v23 = vrot.slane %v460_v21, 1 }
  0xb3   : > { %vm462_vm3 = vcmp.ne.s32.totalorder %v461_v23, 0  ;;  %v437_v23 = vrot.slane %v1193_v9, %v1290_v32 }
  0xb4   : > { %v463_v26 = vsel %vm462_vm3, 1, %v1037_v0  ;;  %v508_v27 = vpop.permute.xlu1 %507  ;;  %vm1331_vm3 = vcmp.eq.s32.totalorder %v282_v44, 1 }
  0xb5   : > { %v467_v29 = vrot.slane %v463_v26, %v1279_v22  ;;  %v509_v30 = vrot.slane %v508_v27, 1 }
  0xb6   : > { %v557_v31 = vpop.permute.xlu0 %556 }
  0xb7   : > { %vm468_vm4 = vcmp.eq.s32.totalorder %v467_v29, 1  ;;  %vm510_vm8 = vcmp.ne.s32.totalorder %v509_v30, 0  ;;  %v558_v34 = vrot.slane %v557_v31, 1  ;;  %v629_v30 = vld [vmem:[%s1488_s2] sm:$0xff] }
  0xb8   : > { %v511_v36 = vsel %vm510_vm8, 1, %v1037_v0  ;;  %v469_v37 = vsel %vm468_vm4, %v1183_v5, 0.0  ;;  %vm290_vm4 = vcmask 134144  }
  0xb9   : > { %v515_v39 = vrot.slane %v511_v36, %v1279_v22  ;;  %vm559_vm6 = vcmp.ne.s32.totalorder %v558_v34, 0  ;;  %v471_v40 = vrot.slane %v469_v37, 4  ;;  %v433_v37 = vrot.slane %v1193_v9, %v1279_v22 }
  0xba   : > { %v560_v41 = vsel %vm559_vm6, 1, %v1037_v0  ;;  %v319_v43 = vpop.permute.xlu0 %318  ;;  %vm299_vm6 = vcmask 138240  }
  0xbb   : > { %v564_v45 = vrot.slane %v560_v41, %v1279_v22  ;;  %472 = vrot.lane.b32.xlu0 %v471_v40, %s1042_s27  ;;  %v601_v46 = vpop.permute.xlu1 %600  ;;  %vm516_vm14 = vcmp.eq.s32.totalorder %v515_v39, 1  ;;  %v321_v47 = vsel %vm1300_vm11, %v319_v43, 0.0  ;;  %v534_v39 = vrot.slane %v1219_v13, %v1290_v32 }
  0xbc   : > { %v602_v49 = vrot.slane %v601_v46, 1  ;;  %v517_v50 = vsel %vm516_vm14, %v1183_v5, 0.0  ;;  %v323_v51 = vrot.slane %v321_v47, 4  ;;  %vm305_vm14 = vcmask 1043592  }
  0xbd   : > { %vm565_vm5 = vcmp.eq.s32.totalorder %v564_v45, 1  ;;  %519 = vrot.lane.b32.xlu1 %v517_v50, %s1044_s30  ;;  %v491_v46 = vrot.slane %v1212_v12, %v1290_v32  ;;  %s966_s30 = scalar_lea.vmem %s1435_s19, 512 }
  0xbe   : > { %vm603_vm15 = vcmp.ne.s32.totalorder %v602_v49, 0  ;;  %v566_v54 = vsel %vm565_vm5, %v1183_v5, 0.0  ;;  %326 = vst.msk [vmem:[#allocation2] sm:$0xf0] %vm325_vm2, %v323_v51  ;;  %v394_v56 = vpop.permute.xlu0 %393  ;;  %vm1369_vm2 = vcmp.eq.s32.totalorder %v358_v62, 1  ;;  %vm373_vm5 = vcmask 121856   ;;  %p967_p6 = scmp.ne.s32.totalorder %s1435_s19, %s966_s30 }
  0xbf   : > { %v604_v58 = vsel %vm603_vm15, 1, %v1037_v0  ;;  %v568_v59 = vrot.slane %v566_v54, 4  ;;  %v333_v60 = vpop.permute.xlu1 %332  ;;  %v396_v61 = vsel %vm1313_vm0, %v394_v56, 0.0  ;;  %vm457_vm15 = vcmask 1039364  }
  0xc0   : > { %v608_v63 = vrot.slane %v604_v58, %v1279_v22  ;;  %v338_v1 = vsel %vm1300_vm11, %v333_v60, 0.0  ;;  %v335_v2 = vsel %vm334_vm7, %v333_v60, %v319_v43  ;;  %v398_v3 = vrot.slane %v396_v61, 4  ;;  %p968_p10 = pnand %p967_p6, %p1537_p9 }
  0xc1   : > { %569 = vrot.lane.b32.xlu0 %v568_v59, %s1043_s29  ;;  %589 = vrot.lane.b32.xlu1 %v1190_v8, %s1045_s11  ;;  %v342_v0 = vrot.slane %v338_v1, 4  ;;  %v339_v4 = vsel %vm1326_vm1, %v335_v2, 0.0  ;;  %vm421_vm11 = vcmask 1047564   ;;  %vm364_vm7 = vcmask 117760   ;;  %s1444_s29 = scalar_lea.sflag [#allocation6], %s258_s15 }
  0xc2   : > { %vm1352_vm8 = vcmp.eq.s32.totalorder %v608_v63, 1  ;;  %v343_v10 = vrot.slane %v339_v4, 4  ;;  %401 = vst.msk [vmem:[#allocation2 + $0x10] sm:$0xf0] %vm400_vm13, %v398_v3  ;;  %v287_v8 = vpop.permute.xlu0 %286  ;;  %vm1405_vm13 = vcmp.eq.s32.totalorder %v369_v28, 1  ;;  %vm444_vm1 = vcmask 1039360   ;;  %p969_p12 = pneg %p968_p10 }
  0xc3   : > { %v610_v14 = vsel %vm1352_vm8, %v1183_v5, 0.0  ;;  %347 = vst.msk [vmem:[#allocation2] sm:$0xf0] %vm346_vm9, %v342_v0  ;;  %v408_v16 = vpop.permute.xlu1 %407  ;;  %v289_v17 = vsel %vm1331_vm3, %v287_v8, 0.0  ;;  %vm1378_vm9 = vcmp.eq.s32.totalorder %v295_v11, 1  ;;  %vm1419_vm8 = vcmp.eq.s32.totalorder %v491_v46, 1 }
  0xc4   : > { %348 = vst [vmem:[#allocation2 + $0x8] sm:$0xf0] %v343_v10  ;;  %v413_v19 = vsel %vm1313_vm0, %v408_v16, 0.0  ;;  %v410_v20 = vsel %vm409_vm12, %v408_v16, %v394_v56  ;;  %291 = vst.msk [vmem:[#allocation2] sm:$0xf] %vm290_vm4, %v289_v17  ;;  %vm1395_vm0 = vcmp.eq.s32.totalorder %v437_v23, 1  ;;  %v584_v11 = vrot.slane %v1233_v15, %v1290_v32 }
  0xc5   : > { %587 = vrot.lane.b32.xlu0 %v1183_v5, %s1045_s11  ;;  %612 = vrot.lane.b32.xlu1 %v610_v14, %s1045_s11  ;;  %v417_v24 = vrot.slane %v413_v19, 4  ;;  %v414_v25 = vsel %vm1348_vm10, %v410_v20, 0.0  ;;  %v630_v5 = vld [vmem:[%s1488_s2 + $0x8] sm:$0xff]  ;;  %vm379_vm12 = vcmask 1043576   ;;  %vm438_vm10 = vcmp.eq.s32.totalorder %v433_v37, 1  ;;  %s1047_s11 = smov [#allocation7]  }
  0xc6   : > { %v418_v26 = vrot.slane %v414_v25, 4  ;;  %v361_v29 = vpop.permute.xlu0 %360  ;;  %vm554_vm4 = vcmask 916484   ;;  %v580_v14 = vrot.slane %v1233_v15, %v1279_v22  ;;  %s970_s13 = sshll.u32 %s1047_s11, 4  ;;  %s971_s13 = int_to_ptr.vmem [resolvable:$false] %s970_s13 }
  0xc7   : > { %422 = vst.msk [vmem:[#allocation2 + $0x10] sm:$0xf0] %vm421_vm11, %v417_v24  ;;  %v298_v31 = vpop.permute.xlu1 %297  ;;  %v363_v33 = vsel %vm1369_vm2, %v361_v29, 0.0  ;;  %vm541_vm11 = vcmask 916480   ;;  %s972_s12 = scalar_lea.vmem %s971_s13, 1024  ;;  %p973_p2 = scmp.lt.s32.totalorder %s1435_s19, %s971_s13 }
  0xc8   : > { %423 = vst [vmem:[#allocation2 + $0x18] sm:$0xf0] %v418_v26  ;;  %v303_v34 = vsel %vm1331_vm3, %v298_v31, 0.0  ;;  %v300_v35 = vsel %vm299_vm6, %v298_v31, %v287_v8  ;;  %365 = vst.msk [vmem:[#allocation2 + $0x10] sm:$0xf] %vm364_vm7, %v363_v33  ;;  %vm536_vm3 = vcmp.eq.s32.totalorder %v534_v39, 1  ;;  %p974_p3 = scmp.lt.s32.totalorder %s972_s12, %s966_s30 }
  0xc9   : > { %v304_v38 = vsel %vm1378_vm9, %v300_v35, 0.0  ;;  %306 = vst.msk [vmem:[#allocation2] sm:$0xf] %vm305_vm14, %v303_v34  ;;  %638 = vperm.xlu1 %936, %v630_v5   ;;  %633 = vperm.xlu0 %935, %v629_v30   ;;  %vm535_vm6 = vcmp.eq.s32.totalorder %v530_v48, 1  ;;  %vm498_vm7 = vcmask 924672   ;;  %vm492_vm9 = vcmp.eq.s32.totalorder %v487_v57, 1 }
  0xca   : > { %307 = vst [vmem:[#allocation2 + $0x8] sm:$0xf] %v304_v38  ;;  %v443_v41 = vpop.permute.xlu0 %442  ;;  %vm475_vm14 = vcmask 1048572   ;;  %v618_v5 = vld [vmem:[#allocation4 + $0x8] sm:$0xff]  ;;  %v737_v34 = vstv %s732_s16  ;;  %p975_p4 = por %p974_p3, %p973_p2 }
  0xcb   : > { %v372_v42 = vpop.permute.xlu1 %371  ;;  %v449_v9 = vsel %vm1395_vm0, %v443_v41, 0.0  ;;  %vm522_vm0 = vcmask 1044360  }
  0xcc   : > { %v377_v43 = vsel %vm1369_vm2, %v372_v42, 0.0  ;;  %v374_v44 = vsel %vm373_vm5, %v372_v42, %v361_v29  ;;  %v453_v45 = vrot.slane %v449_v9, 4  ;;  %vm505_vm2 = vcmask 920576   ;;  %v617_v29 = vld [vmem:[#allocation4] sm:$0xff]  ;;  %p976_p7 = pnand %p975_p4, %p969_p12 }
  0xcd   : > { %v378_v47 = vsel %vm1405_vm13, %v374_v44, 0.0  ;;  %380 = vst.msk [vmem:[#allocation2 + $0x10] sm:$0xf] %vm379_vm12, %v377_v43  ;;  %vm572_vm5 = vcmask 1048452   ;;  %vm586_vm13 = vcmp.eq.s32.totalorder %v584_v11, 1  ;;  %vm598_vm12 = vcmask 904192  }
  0xce   : > { %381 = vst [vmem:[#allocation2 + $0x18] sm:$0xf] %v378_v47  ;;  %458 = vst.msk [vmem:[#allocation2 + $0x28] sm:$0xf0] %vm457_vm15, %v453_v45  ;;  %v441_v49 = vpop.permute.xlu0 %440  ;;  %vm591_vm15 = vcmask 908288  }
  0xcf   : > { %v540_v50 = vpop.permute.xlu1 %539  ;;  %v445_v51 = vsel %vm444_vm1, %v441_v49, %v443_v41  ;;  %vm615_vm1 = vcmask 1044344  }
  0xd0   : > { %v546_v52 = vsel %vm536_vm3, %v540_v50, 0.0  ;;  %v448_v53 = vsel %vm438_vm10, %v445_v51, 0.0  ;;  %v619_v13 = vld [vmem:[#allocation2] sm:$0xff]  ;;  %vm585_vm3 = vcmp.eq.s32.totalorder %v580_v14, 1  ;;  %vm648_vm10 = vcmask 1043456  }
  0xd1   : > { %v550_v55 = vrot.slane %v546_v52, 4  ;;  %v452_v56 = vrot.slane %v448_v53, 4  ;;  %v620_v60 = vld [vmem:[#allocation2 + $0x8] sm:$0xff] }
  0xd2   : > { %v497_v58 = vpop.permute.xlu0 %496 }
  0xd3   : > { %555 = vst.msk [vmem:[#allocation2 + $0x38] sm:$0xf0] %vm554_vm4, %v550_v55  ;;  %v538_v59 = vpop.permute.xlu1 %537  ;;  %456 = vst [vmem:[#allocation2 + $0x20] sm:$0xf0] %v452_v56  ;;  %v503_v61 = vsel %vm1419_vm8, %v497_v58, 0.0  ;;  %vm641_vm4 = vcmask 293888  }
  0xd4   : > { %v542_v62 = vsel %vm541_vm11, %v538_v59, %v540_v50  ;;  %v621_v63 = vld [vmem:[#allocation2 + $0x10] sm:$0xff]  ;;  %506 = vst.msk [vmem:[#allocation2 + $0x38] sm:$0xf] %vm505_vm2, %v503_v61 }
  0xd5   : > { %v545_v1 = vsel %vm535_vm6, %v542_v62, 0.0  ;;  %v622_v2 = vld [vmem:[#allocation2 + $0x18] sm:$0xff]  ;;  %v860_v3 = vpack.c.bf16 %v621_v63, %v619_v13 }
  0xd6   : > { %v549_v0 = vrot.slane %v545_v1, 4  ;;  %v858_v4 = vpack.c.bf16 %v622_v2, %v620_v60 }
  0xd7   : > { %v495_v12 = vpop.permute.xlu1 %494 }
  0xd8   : > { %553 = vst [vmem:[#allocation2 + $0x30] sm:$0xf0] %v549_v0  ;;  %859 = vmatprep.subr.bf16.mxu0 %v858_v4  ;;  %866 = vmatprep.subr.bf16.mxu1 %v858_v4  ;;  %v499_v6 = vsel %vm498_vm7, %v495_v12, %v497_v58 }
  0xd9   : > { %861 = vmatpush1.bf16.msra.mxu0 %v860_v3  ;;  %869 = vmatpush1.bf16.msra.mxu1 %v860_v3  ;;  %v502_v7 = vsel %vm492_vm9, %v499_v6, 0.0 }
  0xda   : > { %504 = vst [vmem:[#allocation2 + $0x30] sm:$0xf] %v502_v7  ;;  %v623_v23 = vld [vmem:[#allocation2 + $0x20] sm:$0xff] }
  0xe1   : > { %v625_v24 = vld [vmem:[#allocation2 + $0x30] sm:$0xff] }
  0xe2   : > { %v864_v22 = vpack.c.bf16 %v625_v24, %v623_v23 }
 0x12d   : > { %v473_v10 = vpop.permute.xlu0 %472 }
 0x12e   : > { %476 = vst.msk [vmem:[#allocation2 + $0x28] sm:$0xf0] %vm475_vm14, %v473_v10 }
 0x12f   : > { %v520_v8 = vpop.permute.xlu1 %519 }
 0x130   : > { %523 = vst.msk [vmem:[#allocation2 + $0x38] sm:$0xf] %vm522_vm0, %v520_v8 }
 0x133   : > { %v570_v16 = vpop.permute.xlu0 %569  ;;  %v590_v17 = vpop.permute.xlu1 %589 }
 0x134   : > { %573 = vst.msk [vmem:[#allocation2 + $0x38] sm:$0xf0] %vm572_vm5, %v570_v16  ;;  %v596_v18 = vsel %vm586_vm13, %v590_v17, 0.0 }
 0x135   : > { %599 = vst.msk [vmem:[#allocation2 + $0x48] sm:$0xf] %vm598_vm12, %v596_v18  ;;  %v624_v25 = vld [vmem:[#allocation2 + $0x28] sm:$0xff] }
 0x137   : > { %v588_v19 = vpop.permute.xlu0 %587  ;;  %v613_v20 = vpop.permute.xlu1 %612 }
 0x138   : > { %v592_v32 = vsel %vm591_vm15, %v588_v19, %v590_v17  ;;  %616 = vst.msk [vmem:[#allocation2 + $0x48] sm:$0xf] %vm615_vm1, %v613_v20 }
 0x139   : > { %v595_v21 = vsel %vm585_vm3, %v592_v32, 0.0 }
 0x13a   : > { %597 = vst [vmem:[#allocation2 + $0x40] sm:$0xf] %v595_v21 }
 0x13b   : > { %v626_v26 = vld [vmem:[#allocation2 + $0x38] sm:$0xff] }
 0x13c   : > { %v862_v15 = vpack.c.bf16 %v626_v26, %v624_v25 }
 0x13e   : > { %863 = vmatprep.subr.bf16.mxu0 %v862_v15  ;;  %867 = vmatprep.subr.bf16.mxu1 %v862_v15 }
 0x13f   : > { %865 = vmatpush1.bf16.msra.mxu0 %v864_v22  ;;  %870 = vmatpush1.bf16.msra.mxu1 %v864_v22  ;;  %v628_v27 = vld [vmem:[#allocation2 + $0x48] sm:$0xf] }
 0x140   : > { %847 = vmatprep.subr.msk.mxu0 %vm648_vm10, %v628_v27  ;;  %868 = vmatprep.subr.msk.mxu1 %vm648_vm10, %v628_v27 }
 0x141   : > { %v627_v28 = vld [vmem:[#allocation2 + $0x40] sm:$0xf] }
 0x143   : > { %848 = vmatpush1.msk.msra.mxu0 %vm648_vm10, %v627_v28  ;;  %871 = vmatpush1.msk.msra.mxu1 %vm648_vm10, %v627_v28 }
 0x144   : > { %849 = vmatmul.mubr.msk.f32.vlgmr.msra.gmra.mrb[0].mxu0 %vm641_vm4, %v617_v29  ;;  %850 = vmatmul.mubr.msk.f32.vlgmr.msra.gmra.mrb[0].mxu1 %vm641_vm4, %v618_v5 }
 0x148   : > { %v639_v30 = vpop.permute.xlu1 %638  ;;  %v634_v31 = vpop.permute.xlu0 %633 }
 0x217   : > { %v721_v33 = vpop.f32.mrb[0].mxu0  ;;  %v727_v35 = vpop.f32.mrb[0].mxu1 }
 0x218   : > { %v722_v36 = vadd.f32 %v721_v33, %v634_v31  ;;  %v728_v37 = vadd.f32 %v727_v35, %v639_v30  ;;  %v723_v38 = vpop.f32.mrb[1].mxu0  ;;  %v729_v39 = vpop.f32.mrb[1].mxu1 }
 0x219   : > { %v724_v40 = vadd.f32 %v723_v38, %v634_v31  ;;  %v730_v41 = vadd.f32 %v729_v39, %v639_v30 }
 0x21a   : > { %vm733_vm8 = vcmp.gt.f32.partialorder %v722_v36, 0.0  ;;  %v738_v42 = vmul.f32 %v737_v34, %v722_v36  ;;  %vm735_vm11 = vcmp.gt.f32.partialorder %v728_v37, 0.0  ;;  %v740_v9 = vmul.f32 %v737_v34, %v728_v37 }
 0x21b   : > { %vm734_vm2 = vcmp.gt.f32.partialorder %v724_v40, 0.0  ;;  %v739_v43 = vmul.f32 %v737_v34, %v724_v40  ;;  %vm736_vm6 = vcmp.gt.f32.partialorder %v730_v41, 0.0  ;;  %v741_v44 = vmul.f32 %v737_v34, %v730_v41 }
 0x21c   : > { %v742_v45 = vsel %vm733_vm8, %v722_v36, %v738_v42  ;;  %v744_v46 = vsel %vm735_vm11, %v728_v37, %v740_v9 }
 0x21d   : > { %746 = vst [vmem:[%s260_s18] sm:$0xff] %v742_v45  ;;  %748 = vst [vmem:[%s260_s18 + $0x10] sm:$0xff] %v744_v46  ;;  %v743_v47 = vsel %vm734_vm2, %v724_v40, %v739_v43  ;;  %v745_v48 = vsel %vm736_vm6, %v730_v41, %v741_v44 }
 0x21e   : > { %747 = vst [vmem:[%s260_s18 + $0x8] sm:$0xff] %v743_v47  ;;  %749 = vst [vmem:[%s260_s18 + $0x18] sm:$0xff] %v745_v48 }
 0x21f   : > { %979 = shalt.err (!%p976_p7)
}
 0x220   : > { %s980_s14 = scalar_lea.hbm %s1440_s5, 512  ;;  %s984_s16 = scalar_lea.hbm %s1492_s6, 1024 }
 0x221   : > { %p981_p8 = scmp.ne.s32.totalorder %s1440_s5, %s980_s14  ;;  %p985_p1 = scmp.lt.u32.totalorder %s1440_s5, %s1492_s6 }
 0x222   : > { %p986_p0 = scmp.lt.u32.totalorder %s984_s16, %s980_s14  ;;  %p988_p6 = scmp.lt.u32.totalorder %s980_s14, %s1440_s5 }
 0x223   : > { %p982_p11 = pnand %p981_p8, %p1537_p9 }
 0x224   : > { %p987_p5 = por %p986_p0, %p985_p1 }
 0x225   : > { %p983_p13 = pneg %p982_p11 }
 0x226   : > { %p989_p10 = por %p988_p6, %p987_p5 }
 0x228   : > { %p990_p12 = pnand %p989_p10, %p983_p13 }
 0x22a   : > { %993 = shalt.err (!%p990_p12)
}
 0x22b   : > { %s1048_s20 = smov 256  }
 0x22c   : > { %876 = dma.vmem_to_hbm [thread:$0]  (%p1537_p9), %s1435_s19, 512, %s1440_s5, %s1444_s29, %s1048_s20, %s1048_s20, %s1040_s21  }
 0x22d PF: > { %p888_p2 = scmp.ge.s32.totalorder %s1032_s26, 2  ;;  %s779_s22 = sand.u32 1, %s1020_s23  }
 0x22e   : > { %p1538_p3 = scmp.ne.s32.totalorder %s1497_s9, 0  ;;  %s780_s27 = scalar_lea.sflag [#allocation6], %s779_s22 }
 0x230   : > { %p883_p4 = pnand %p888_p2, %p1538_p3 }
 0x232   : > { %1015 = dma.done.wait (!%p883_p4), %s780_s27, 512  }
 0x233   : > { %1017 = vsyncadd (!%p883_p4), %s780_s27, 4294966784  ;;  %p18_p7 = scmp.ge.s32.totalorder %s1112_s28, 4   ;;  %s1539_s23 = smov %s1024_s24 }
 0x234   : > { %s1540_s24 = smov %s1028_s25  ;;  %s1541_s25 = smov %s1123_s7 }
 0x235   : > { %s1542_s26 = smov %s1112_s28  ;;  %20 = sbr.rel (!%p18_p7) target bundleno = 6 (0x6), region = 84 }
 0x23c   :  { %785 = vsyncpa [#allocation5], 1 }
 0x23d   :  { %787 = vsyncpa [#allocation5 + $0x1], 1 }
 0x23e   :  { %788 = vsyncpa [#allocation6], 1 }
 0x23f   :  { %790 = vsyncpa [#allocation6 + $0x1], 1 }

</bundles_post_ra>
